<compile_context>
chip_gen: v7x
topology: tpu7x:2x2x1
jax: 0.10.0
libtpu: 0.0.40
codegen_flags: <defaults>
</compile_context>

<pallas_src>
import functools

import jax
import jax.numpy as jnp
from jax.experimental import pallas as pl
from jax.experimental.pallas import tpu as pltpu

LANE = 128
SUB_ROWS = 256       # in-kernel sub-tile: bounds vreg live ranges for big tiles
NEG_BIG = -1e30      # bias on padded action lanes -> exp underflows to exactly 0


def _round_up(n, m):
    return ((n + m - 1) // m) * m


def actor_kernel(x_ref, w1_ref, b1_ref, w2_ref, b2_ref, out_ref, *, sub):
    """One batch tile: fc1 (VPU) -> ReLU -> fc2 (MXU) -> exact softmax.

    The (tb, *) block is processed in `sub`-row slabs so raising the DMA tile
    size does not blow up register live ranges (logits/e are 128 lanes wide).
    """
    w1 = w1_ref[...]                           # (num_state, hidden)
    w2 = w2_ref[...]                           # (hidden, pad_a)
    num_state, hidden = w1.shape
    pad_a = w2.shape[1]
    tb = x_ref.shape[0]
    n_sub = tb // sub

    # Hoisted broadcasts (JAX does not CSE broadcast_in_dim inside loops).
    b1b = jnp.broadcast_to(b1_ref[...], (sub, hidden))
    b2b = jnp.broadcast_to(b2_ref[...], (sub, pad_a))

    def compute(s):
        r0 = pl.multiple_of(s * sub, sub)
        x = x_ref[pl.ds(r0, sub), :]                        # (sub, num_state)

        # ---- fc1 + ReLU on the VPU (K = num_state = 2; skip the MXU) ----
        h = b1b
        for k in range(num_state):                          # static unroll
            h = h + x[:, k:k + 1] * w1[k:k + 1, :]
        h = jnp.maximum(h, 0.0)

        # ---- fc2 on the MXU: (sub, hidden) @ (hidden, pad_a) ----
        logits = jnp.dot(h, w2, preferred_element_type=jnp.float32) + b2b

        # ---- numerically stable, EXACT softmax (padded lanes -> exactly 0) ----
        m = jnp.max(logits, axis=1, keepdims=True)
        e = jnp.exp(logits - m)
        denom = jnp.sum(e, axis=1, keepdims=True)
        probs = e / denom                                   # exact divide
        out_ref[pl.ds(r0, sub), :] = probs.astype(out_ref.dtype)

    if n_sub == 1:
        compute(0)
    else:
        def body(s, carry):
            compute(s)
            return carry
        jax.lax.fori_loop(0, n_sub, body, 0, unroll=(n_sub <= 8))


def _choose_tiles(batch, max_tile_batch):
    """Pick (batch_tile, sub_tile).

    Guarantees >=2 grid tiles for batches > SUB_ROWS (so both v7x TensorCores
    get work) and batch_tile % sub_tile == 0."""
    if batch <= SUB_ROWS:
        tb = _round_up(batch, 8)
        return tb, tb
    half = _round_up(pl.cdiv(batch, 2), SUB_ROWS)
    cap = max(SUB_ROWS, _round_up(max_tile_batch, SUB_ROWS))
    return min(cap, half), SUB_ROWS


def actor_forward(x, w1, b1, w2, b2, *, max_tile_batch=2048,
                  out_dtype=jnp.float32, return_padded=False):
    batch, num_state = x.shape
    hidden = w1.shape[1]
    num_action = w2.shape[1]

    # Pad the action axis to a lane-dense multiple of 128 (unmasked stores,
    # dense DMA writeback). Padded action lanes end up exactly 0 in the output.
    pad_a = _round_up(max(num_action, LANE), LANE)
    w2p = jnp.zeros((hidden, pad_a), jnp.float32).at[:, :num_action].set(w2)
    b2p = jnp.full((1, pad_a), NEG_BIG, jnp.float32).at[:, :num_action].set(b2)

    tb, sub = _choose_tiles(batch, max_tile_batch)
    padded_batch = _round_up(batch, tb)
    if padded_batch != batch:
        x = jnp.pad(x, ((0, padded_batch - batch), (0, 0)))
    grid = (padded_batch // tb,)

    cost = pl.CostEstimate(
        flops=2 * padded_batch * (num_state * hidden + hidden * pad_a),
        transcendentals=padded_batch * pad_a,
        bytes_accessed=4 * (padded_batch * num_state + num_state * hidden
                            + hidden + hidden * pad_a + pad_a)
        + jnp.dtype(out_dtype).itemsize * padded_batch * pad_a,
    )

    out = pl.pallas_call(
        functools.partial(actor_kernel, sub=sub),
        out_shape=jax.ShapeDtypeStruct((padded_batch, pad_a), out_dtype),
        grid_spec=pltpu.PrefetchScalarGridSpec(
            num_scalar_prefetch=0,
            grid=grid,
            in_specs=[
                pl.BlockSpec((tb, num_state), lambda i: (i, 0)),      # x tile
                pl.BlockSpec((num_state, hidden), lambda i: (0, 0)),  # w1 (resident)
                pl.BlockSpec((1, hidden), lambda i: (0, 0)),          # b1 (resident)
                pl.BlockSpec((hidden, pad_a), lambda i: (0, 0)),      # w2 (resident)
                pl.BlockSpec((1, pad_a), lambda i: (0, 0)),           # b2 (resident)
            ],
            out_specs=pl.BlockSpec((tb, pad_a), lambda i: (i, 0)),
        ),
        compiler_params=pltpu.CompilerParams(
            dimension_semantics=("parallel",),  # batch tiles shard across v7x's 2 TCs
        ),
        cost_estimate=cost,
    )(x, w1, b1, w2p, b2p)

    if return_padded:
        # (padded_batch, pad_a): padded ACTION lanes are exactly 0 (safe to
        # consume directly); padded BATCH rows are garbage and must be
        # masked/sliced by the consumer.  Avoids the compacting slice copy.
        return out
    return out[:batch, :num_action]


def init_actor_params(key, num_state, num_action, hidden=32):
    """Deterministic init mimicking torch.nn.Linear default (U[-1/sqrt(fan_in), +])."""
    k1, k2, k3, k4 = jax.random.split(key, 4)
    bound1 = 1.0 / jnp.sqrt(jnp.float32(num_state))
    bound2 = 1.0 / jnp.sqrt(jnp.float32(hidden))
    w1 = jax.random.uniform(k1, (num_state, hidden), jnp.float32, -bound1, bound1)
    b1 = jax.random.uniform(k2, (1, hidden), jnp.float32, -bound1, bound1)
    w2 = jax.random.uniform(k3, (hidden, num_action), jnp.float32, -bound2, bound2)
    b2 = jax.random.uniform(k4, (1, num_action), jnp.float32, -bound2, bound2)
    return w1, b1, w2, b2


if __name__ == "__main__":
    # MountainCar-v0: num_state = 2, num_action = 3
    batch, num_state, num_action = 8, 2, 3

    key = jax.random.PRNGKey(0)
    kx, kp, kx2 = jax.random.split(key, 3)
    x = jax.random.normal(kx, (batch, num_state), dtype=jnp.float32)
    w1, b1, w2, b2 = init_actor_params(kp, num_state, num_action)

    a_prob = jax.block_until_ready(actor_forward(x, w1, b1, w2, b2))

    # rows are valid probability distributions (exact softmax -> tight check)
    assert a_prob.shape == (batch, num_action)
    assert bool(jnp.all(jnp.isfinite(a_prob)))
    assert bool(jnp.allclose(jnp.sum(a_prob, axis=1), 1.0, atol=1e-5))

    # cross-check against plain-JAX reference (tolerance covers MXU default
    # f32 matmul precision on real hardware)
    ref_h = jnp.maximum(x @ w1 + b1, 0.0)
    ref = jax.nn.softmax(ref_h @ w2 + b2, axis=1)
    assert bool(jnp.allclose(a_prob, ref, atol=2e-3))

    # Exercise the multi-tile (>=2 grid steps), in-kernel sub-tiling and
    # batch-padding paths with a modest PPO-style minibatch.
    batch2 = 600
    x2 = jax.random.normal(kx2, (batch2, num_state), dtype=jnp.float32)
    a_prob2 = jax.block_until_ready(actor_forward(x2, w1, b1, w2, b2))
    ref2 = jax.nn.softmax(jnp.maximum(x2 @ w1 + b1, 0.0) @ w2 + b2, axis=1)
    assert a_prob2.shape == (batch2, num_action)
    assert bool(jnp.allclose(jnp.sum(a_prob2, axis=1), 1.0, atol=1e-5))
    assert bool(jnp.allclose(a_prob2, ref2, atol=2e-3))

    print("KERNEL_OK")
</pallas_src>

<mosaic_0001>
module attributes {stable_mosaic.version = 11 : i64} {
  func.func @actor_kernel(%arg0: i32, %arg1: memref<8x2xf32, #tpu.memory_space<vmem>>, %arg2: memref<2x32xf32, #tpu.memory_space<vmem>>, %arg3: memref<1x32xf32, #tpu.memory_space<vmem>>, %arg4: memref<32x128xf32, #tpu.memory_space<vmem>>, %arg5: memref<1x128xf32, #tpu.memory_space<vmem>>, %arg6: memref<8x128xf32, #tpu.memory_space<vmem>>) attributes {dimension_semantics = [#tpu.dimension_semantics<parallel>], iteration_bounds = array<i64: 1>, scalar_prefetch = 0 : i64, scratch_operands = 0 : i64, tpu.core_type = #tpu.core_type<tc>, window_params = [{transform_indices = @transform_0, window_bounds = array<i64: 8, 2>}, {pipeline_mode = #tpu.pipeline_mode<synchronous>, transform_indices = @transform_1, window_bounds = array<i64: 2, 32>}, {pipeline_mode = #tpu.pipeline_mode<synchronous>, transform_indices = @transform_2, window_bounds = array<i64: 1, 32>}, {pipeline_mode = #tpu.pipeline_mode<synchronous>, transform_indices = @transform_3, window_bounds = array<i64: 32, 128>}, {pipeline_mode = #tpu.pipeline_mode<synchronous>, transform_indices = @transform_4, window_bounds = array<i64: 1, 128>}, {transform_indices = @transform_5, window_bounds = array<i64: 8, 128>}]} {
    %c0 = arith.constant 0 : index
    %c0_0 = arith.constant 0 : index
    %0 = vector.load %arg2[%c0, %c0_0] : memref<2x32xf32, #tpu.memory_space<vmem>>, vector<2x32xf32>
    %c0_1 = arith.constant 0 : index
    %c0_2 = arith.constant 0 : index
    %1 = vector.load %arg4[%c0_1, %c0_2] : memref<32x128xf32, #tpu.memory_space<vmem>>, vector<32x128xf32>
    %c0_3 = arith.constant 0 : index
    %c0_4 = arith.constant 0 : index
    %2 = vector.load %arg3[%c0_3, %c0_4] : memref<1x32xf32, #tpu.memory_space<vmem>>, vector<1x32xf32>
    %3 = vector.shape_cast %2 : vector<1x32xf32> to vector<1x32xf32>
    %4 = vector.broadcast %3 : vector<1x32xf32> to vector<8x32xf32>
    %c0_5 = arith.constant 0 : index
    %c0_6 = arith.constant 0 : index
    %5 = vector.load %arg5[%c0_5, %c0_6] : memref<1x128xf32, #tpu.memory_space<vmem>>, vector<1x128xf32>
    %6 = vector.shape_cast %5 : vector<1x128xf32> to vector<1x128xf32>
    %7 = vector.broadcast %6 : vector<1x128xf32> to vector<8x128xf32>
    %c0_i32 = arith.constant 0 : i32
    %8 = tpu.assume_multiple %c0_i32, 8 : i32
    %9 = arith.index_cast %8 : i32 to index
    %c0_7 = arith.constant 0 : index
    %10 = vector.load %arg1[%9, %c0_7] : memref<8x2xf32, #tpu.memory_space<vmem>>, vector<8x2xf32>
    %11 = vector.extract_strided_slice %10 {offsets = [0, 0], sizes = [8, 1], strides = [1, 1]} : vector<8x2xf32> to vector<8x1xf32>
    %12 = vector.extract_strided_slice %0 {offsets = [0, 0], sizes = [1, 32], strides = [1, 1]} : vector<2x32xf32> to vector<1x32xf32>
    %13 = vector.broadcast %11 : vector<8x1xf32> to vector<8x32xf32>
    %14 = vector.broadcast %12 : vector<1x32xf32> to vector<8x32xf32>
    %15 = arith.mulf %13, %14 : vector<8x32xf32>
    %16 = arith.addf %4, %15 : vector<8x32xf32>
    %17 = vector.extract_strided_slice %10 {offsets = [0, 1], sizes = [8, 1], strides = [1, 1]} : vector<8x2xf32> to vector<8x1xf32>
    %18 = vector.extract_strided_slice %0 {offsets = [1, 0], sizes = [1, 32], strides = [1, 1]} : vector<2x32xf32> to vector<1x32xf32>
    %19 = vector.broadcast %17 : vector<8x1xf32> to vector<8x32xf32>
    %20 = vector.broadcast %18 : vector<1x32xf32> to vector<8x32xf32>
    %21 = arith.mulf %19, %20 : vector<8x32xf32>
    %22 = arith.addf %16, %21 : vector<8x32xf32>
    %cst = arith.constant 0.000000e+00 : f32
    %23 = vector.broadcast %cst : f32 to vector<8x32xf32>
    %24 = arith.maximumf %22, %23 : vector<8x32xf32>
    %cst_8 = arith.constant dense<0.000000e+00> : vector<8x128xf32>
    %25 = tpu.matmul %24, %1, %cst_8 {dimension_numbers = #tpu.dot_dimension_numbers<[1], [0], [0], [1], [0, 0, 1, 1], [], []>} : vector<8x32xf32>, vector<32x128xf32>, vector<8x128xf32> -> vector<8x128xf32>
    %26 = arith.addf %25, %7 : vector<8x128xf32>
    %cst_9 = arith.constant dense<0xFF800000> : vector<8xf32>
    %27 = vector.multi_reduction <maximumf>, %26, %cst_9 [1] : vector<8x128xf32> to vector<8xf32>
    %28 = vector.shape_cast %27 : vector<8xf32> to vector<8x1xf32>
    %29 = vector.broadcast %28 : vector<8x1xf32> to vector<8x128xf32>
    %30 = arith.subf %26, %29 : vector<8x128xf32>
    %31 = math.exp %30 : vector<8x128xf32>
    %cst_10 = arith.constant dense<0.000000e+00> : vector<8xf32>
    %32 = vector.multi_reduction <add>, %31, %cst_10 [1] : vector<8x128xf32> to vector<8xf32>
    %33 = vector.shape_cast %32 : vector<8xf32> to vector<8x1xf32>
    %34 = vector.broadcast %33 : vector<8x1xf32> to vector<8x128xf32>
    %35 = arith.divf %31, %34 : vector<8x128xf32>
    %36 = arith.index_cast %8 : i32 to index
    %c0_11 = arith.constant 0 : index
    %37 = vector.load %arg6[%36, %c0_11] : memref<8x128xf32, #tpu.memory_space<vmem>>, vector<8x128xf32>
    tpu.vector_store %arg6[%36, %c0_11], %35 {strides = array<i32>} : memref<8x128xf32, #tpu.memory_space<vmem>>, vector<8x128xf32>,
    return
  }
  func.func @transform_0(%arg0: i32) -> (i32, i32) {
    %c0_i32 = arith.constant 0 : i32
    %c0_i32_0 = arith.constant 0 : i32
    return %arg0, %c0_i32 : i32, i32
  }
  func.func @transform_1(%arg0: i32) -> (i32, i32) {
    %c0_i32 = arith.constant 0 : i32
    %c0_i32_0 = arith.constant 0 : i32
    %c0_i32_1 = arith.constant 0 : i32
    return %c0_i32, %c0_i32_0 : i32, i32
  }
  func.func @transform_2(%arg0: i32) -> (i32, i32) {
    %c0_i32 = arith.constant 0 : i32
    %c0_i32_0 = arith.constant 0 : i32
    %c0_i32_1 = arith.constant 0 : i32
    return %c0_i32, %c0_i32_0 : i32, i32
  }
  func.func @transform_3(%arg0: i32) -> (i32, i32) {
    %c0_i32 = arith.constant 0 : i32
    %c0_i32_0 = arith.constant 0 : i32
    %c0_i32_1 = arith.constant 0 : i32
    return %c0_i32, %c0_i32_0 : i32, i32
  }
  func.func @transform_4(%arg0: i32) -> (i32, i32) {
    %c0_i32 = arith.constant 0 : i32
    %c0_i32_0 = arith.constant 0 : i32
    %c0_i32_1 = arith.constant 0 : i32
    return %c0_i32, %c0_i32_0 : i32, i32
  }
  func.func @transform_5(%arg0: i32) -> (i32, i32) {
    %c0_i32 = arith.constant 0 : i32
    %c0_i32_0 = arith.constant 0 : i32
    return %arg0, %c0_i32 : i32, i32
  }
}

</mosaic_0001>

<bundles_post_ra>
// kernel: tpu_custom_call.1
= control target key start
LH: loop header
LB: loop body
LE: loop exit
PB: predicated region body
PF: predicated region fallthrough
CT: control target
= control target key end

     0   :  { %10 = vsyncpa [#allocation3], 0  ;;  %s339_s0 = inlined_call_operand.vmem [shape: f32[8,2], index: 0, kind: input, shape index: {}]   ;;  %s340_s1 = inlined_call_operand.vmem [shape: f32[2,32], index: 1, kind: input, shape index: {}]   ;;  %s341_s2 = inlined_call_operand.vmem [shape: f32[1,32], index: 2, kind: input, shape index: {}]   ;;  %s342_s3 = inlined_call_operand.hbm [shape: f32[32,128], index: 3, kind: input, shape index: {}]   ;;  %s343_s4 = inlined_call_operand.vmem [shape: f32[1,128], index: 4, kind: input, shape index: {}]   ;;  %s344_s5 = inlined_call_operand.hbm [shape: f32[8,128], index: 5, kind: output, shape index: {}]  }
   0x1   :  { %11 = vsyncpa [#allocation4], 0  ;;  %s264_s18 = smov [#allocation2]   ;;  %s216_s22 = scalar_lea.hbm %s342_s3, 512 }
   0x2   :  { %s23_s19 = sshll.u32 %s264_s18, 4  ;;  %p217_p0 = scmp.ne.s32.totalorder %s342_s3, %s216_s22  ;;  %s24_s19 = int_to_ptr.vmem [resolvable:$true] %s23_s19 }
   0x3   :  { %p220_p1 = scmp.lt.u32.totalorder %s216_s22, %s342_s3 }
   0x5   :  { %p222_p2 = pnand %p220_p1, %p217_p0 }
   0x7   :  { %225 = shalt.err (!%p222_p2)
}
   0x8   :  { %s226_s27 = scalar_lea.vmem %s24_s19, 512  ;;  %p231_p4 = scmp.lt.s32.totalorder %s24_s19, %s24_s19 }
   0x9   :  { %p227_p3 = scmp.ne.s32.totalorder %s24_s19, %s226_s27  ;;  %p232_p5 = scmp.lt.s32.totalorder %s226_s27, %s226_s27 }
   0xb   :  { %p233_p6 = por %p232_p5, %p231_p4 }
   0xd   :  { %p234_p7 = pnand %p233_p6, %p227_p3 }
   0xf   :  { %237 = shalt.err (!%p234_p7)
}
  0x10   :  { %s265_s28 = smov 128   ;;  %s266_s29 = smov 8  }
  0x11   :  { %29 = dma.hbm_to_vmem [thread:$0]  %s342_s3, 512, %s24_s19, [#allocation3], %s265_s28, %s265_s28, %s266_s29  }
  0x12   :  { %260 = dma.done.wait [#allocation3], 512  }
  0x13   :  { %261 = vsyncadd [#allocation3], 4294966784  ;;  %v267_v0 = vmov 0   ;;  %v54_v1 = vld [vmem:[%s339_s0] sm:$0xff]  ;;  %v37_v3 = vld [vmem:[#allocation2 + $0x8] sm:$0xff]  ;;  %v268_v5 = vmov 0.0|0.0   ;;  %v60_v11 = vlaneseq }
  0x14   :  { %210 = vset.pattern.permute.xlu0 %v267_v0  ;;  %v36_v2 = vld [vmem:[#allocation2] sm:$0xff]  ;;  %195 = vmatprep.subr.bf16.mxu0 %v268_v5  ;;  %v269_v6 = vmov 1   ;;  %v38_v7 = vld [vmem:[#allocation2 + $0x10] sm:$0xff]  ;;  %v39_v8 = vld [vmem:[#allocation2 + $0x18] sm:$0xff]  ;;  %vm270_vm0 = vmmov 0   ;;  %v271_v10 = vmov 0.0  }
  0x15   :  { %57 = vperm.xlu0 %210, %v54_v1   ;;  %v196_v4 = vpack.c.bf16 %v37_v3, %v36_v2  ;;  %v199_v9 = vpack.c.bf16 %v39_v8, %v38_v7  ;;  %192 = vmatprep.mubr.msk.f32.mxu0 %vm270_vm0, %v271_v10  ;;  %v61_v12 = vshrl.u32 %v60_v11, 7  ;;  %v35_v14 = vld [vmem:[%s340_s1] sm:$0x3]  ;;  %vm77_vm1 = vcmask 261120   ;;  %s272_s1 = smov [#allocation5]  }
  0x16   :  { %v176_v20 = vld [vmem:[%s341_s2] ss:$0 sm:$0xff]  ;;  %s167_s2 = sshll.u32 %s272_s1, 4  ;;  %s168_s2 = int_to_ptr.vmem [resolvable:$true] %s167_s2 }
  0x17   :  { %197 = vmatpush3.bf16.msra.mxu0 %v196_v4  ;;  %v62_v13 = vsub.s32 0, %v61_v12  ;;  %v72_v16 = vsub.s32 1, %v61_v12  ;;  %v177_v26 = vld [vmem:[%s343_s4] ss:$0 sm:$0xff]  ;;  %s238_s13 = scalar_lea.vmem %s168_s2, 128  ;;  %p243_p9 = scmp.lt.s32.totalorder %s168_s2, %s168_s2 }
  0x18   :  { %198 = vmatprep.subr.bf16.mxu0 %v268_v5  ;;  %p239_p8 = scmp.ne.s32.totalorder %s168_s2, %s238_s13  ;;  %p244_p10 = scmp.lt.s32.totalorder %s238_s13, %s238_s13 }
  0x19   :  { %211 = vset.pattern.permute.xlu0 %v269_v6  ;;  %v63_v15 = vrot.slane %v35_v14, %v62_v13  ;;  %v73_v19 = vrot.slane %v35_v14, %v72_v16 }
  0x1a   :  { %67 = vperm.xlu0 %211, %v54_v1   ;;  %p245_p11 = por %p244_p10, %p243_p9 }
  0x1b   :  { %200 = vmatpush3.bf16.msra.mxu0 %v199_v9 }
  0x1c   :  { %p246_p12 = pnand %p245_p11, %p239_p8 }
  0x94   :  { %v58_v17 = vpop.permute.xlu0 %57 }
  0x95   :  { %v64_v18 = vmul.f32 %v63_v15, %v58_v17 }
  0x97   :  { %v65_v22 = vadd.f32 %v176_v20, %v64_v18 }
  0x99   :  { %v68_v21 = vpop.permute.xlu0 %67 }
  0x9a   :  { %v74_v23 = vmul.f32 %v73_v19, %v68_v21 }
  0x9c   :  { %v75_v24 = vadd.f32 %v74_v23, %v65_v22 }
  0x9e   :  { %v76_v25 = vmax.f32 %v75_v24, 0.0 }
  0xa0   :  { %193 = vmatmul.mubr.msk.f32.vlgmr.msra.gmra.mrb[0].mxu0 %vm77_vm1, %v76_v25 }
 0x173   :  { %v147_v27 = vpop.f32.mrb[0].mxu0 }
 0x174   :  { %v148_v28 = vadd.f32 %v177_v26, %v147_v27  ;;  %v194_v29 = vpop.f32.mrb[1].mxu0 }
 0x176   :  { %151 = vmax.xlane.f32.xlu1 %v148_v28 }
 0x203   :  { %v152_v30 = vpop.xlane.xlu1 %151 }
 0x204   :  { %v153_v31 = vsub.f32 %v148_v28, %v152_v30 }
 0x206   :  { %v154_v32 = vmul.f32 1.442695, %v153_v31 }
 0x208   :  { %212 = vpow2.f32 %v154_v32 }
 0x212   :  { %v213_v33 = vpop.eup %212 }
 0x213   :  { %156 = vadd.xlane.f32.xlu1 %v213_v33 }
 0x2a0   :  { %v157_v34 = vpop.xlane.xlu1 %156 }
 0x2a1   :  { %214 = vrcp.f32 %v157_v34 }
 0x2ab   :  { %v215_v35 = vpop.eup %214 }
 0x2ac   :  { %v159_v36 = vmul.f32 %v215_v35, %v213_v33 }
 0x2ae   :  { %160 = vst [vmem:[#allocation5] sm:$0xff] %v159_v36 }
 0x2af   :  { %249 = shalt.err (!%p246_p12)
}
 0x2b0   :  { %s250_s15 = scalar_lea.hbm %s344_s5, 128 }
 0x2b1   :  { %p251_p13 = scmp.ne.s32.totalorder %s344_s5, %s250_s15  ;;  %p254_p0 = scmp.lt.u32.totalorder %s250_s15, %s344_s5 }
 0x2b3   :  { %p256_p1 = pnand %p254_p0, %p251_p13 }
 0x2b5   :  { %259 = shalt.err (!%p256_p1)
}
 0x2b6   :  { %170 = dma.vmem_to_hbm [thread:$0]  %s168_s2, 128, %s344_s5, [#allocation4]  }
 0x2b7   :  { %262 = dma.done.wait [#allocation4], 128  }
 0x2b8   :  { %263 = vsyncadd [#allocation4], 4294967168 }
 0x2b9   :  { %174 = vsyncpa [#allocation3], 1 }
 0x2ba   :  { %175 = vsyncpa [#allocation4], 1 }

</bundles_post_ra>
